<compile_context>
chip_gen: v7x
topology: tpu7x:2x2x1
jax: 0.10.0
libtpu: 0.0.40
codegen_flags: <defaults>
</compile_context>

<pallas_src>
import math

import jax
import jax.numpy as jnp
import numpy as np
from jax import lax
from jax.experimental import pallas as pl
from jax.experimental.pallas import tpu as pltpu


# ----------------------------------------------------------------------------- helpers
def _round_up(x, m):
    return ((x + m - 1) // m) * m


def _divisors(n):
    ds = set()
    for d in range(1, int(math.isqrt(n)) + 1):
        if n % d == 0:
            ds.add(d)
            ds.add(n // d)
    return sorted(ds)


def _physical_vmem_bytes():
    """Generation-aware physical VMEM size (v5e/v6e: 128 MiB, v7x: 64 MiB)."""
    try:
        info = pltpu.get_tpu_info()
        for name in ("vmem_capacity_bytes", "vmem_bytes", "vmem_size_bytes"):
            v = getattr(info, name, None)
            if v:
                return int(v)
    except Exception:
        pass
    try:
        kind = jax.devices()[0].device_kind.lower()
    except Exception:
        kind = ""
    if any(t in kind for t in ("v4", "v5", "v6")):
        return 128 * 1024 * 1024
    return 64 * 1024 * 1024  # v7x and unknown generations: be conservative


# ----------------------------------------------------------------------------- kernel
def _make_kernel(k, P, base, reps, out_dtype):
    """k: h-rows folded per output row; base = w*f; P: y slab width (mult of f
    and 128 when reps > 1); reps = base // P."""

    def kernel(fx_ref, roff_ref, invp_ref, cx_ref, sx_ref, cy_ref, sy_ref):
        tile_g, K = cx_ref.shape

        # ---- x tables: cos/sin on the (1, K) precomputed freqs_x lane row,
        # then a cheap sublane broadcast across the tile rows (x does not
        # depend on the h index).  EUP work: O(K) per step.
        fx = fx_ref[...]
        cx_ref[...] = jnp.broadcast_to(jnp.cos(fx), (tile_g, K)).astype(out_dtype)
        sx_ref[...] = jnp.broadcast_to(jnp.sin(fx), (tile_g, K)).astype(out_dtype)

        # ---- y tables: hoisted small table (tile_g, k*P).
        #   fy[g, r*P + q] = (g_global*k + r) * inv_freq[q % f]
        g = (pl.program_id(0) * tile_g
             + lax.broadcasted_iota(jnp.int32, (tile_g, 1), 0))
        ybase = (g * k).astype(jnp.float32)            # exact integer h index
        fy = (ybase + roff_ref[...]) * invp_ref[...]   # (tile_g, k*P)
        cs = jnp.cos(fy).astype(out_dtype)
        sn = jnp.sin(fy).astype(out_dtype)

        if reps == 1:
            # Small table already spans the full lane width (k*P == K).
            cy_ref[...] = cs
            sy_ref[...] = sn
        else:
            # Replicate each h-row stretch with 128-aligned static slab
            # stores (the vst slot is far from saturated; HBM DMA stays the
            # bottleneck).  Unroll count is k*reps <= K/128 (bounded by the
            # lane cap / PMAX choices below).
            for r in range(k):
                cslab = cs[:, r * P:(r + 1) * P]
                sslab = sn[:, r * P:(r + 1) * P]
                for c in range(reps):
                    col = r * base + c * P
                    cy_ref[:, col:col + P] = cslab
                    sy_ref[:, col:col + P] = sslab

    return kernel


# ----------------------------------------------------------------------------- module
class RotaryEmbedding2D:
    def __init__(self, dim, temperature=10000):
        if dim % 4 != 0:
            raise ValueError("dim must be divisible by 4")
        half_dim = dim // 2
        self.dim = dim
        # Deterministic buffer, exactly as in the PyTorch __init__.
        self.inv_freq = 1.0 / (
            temperature ** (jnp.arange(0, half_dim, 2, dtype=jnp.float32) / half_dim)
        )  # (dim//4,)

    def __call__(self, h, w, *, tile_g=None, out_dtype=jnp.float32):
        f = int(self.inv_freq.shape[0])
        base = w * f
        inv_np = np.asarray(self.inv_freq, dtype=np.float32)

        # ---- lane-width floor: fold k h-rows into the lane dim when w*f < 512.
        LANE_FLOOR, LANE_CAP = 512, 4096
        if base >= LANE_FLOOR or h <= 1:
            k = 1
        else:
            cands = [d for d in _divisors(h)
                     if LANE_FLOOR <= d * base <= LANE_CAP]
            if cands:
                k = min(cands)                       # widest G for the grid
            else:
                big = [d for d in _divisors(h) if d * base <= LANE_CAP]
                k = max(big) if big else 1
        K = k * base          # output lane width (row-major identical to (k, w, f))
        G = h // k            # output rows

        # ---- y slab width P: multiple of f and (when replicating) of 128,
        # dividing base.  Transcendental hoist ratio for y is P/base.
        PMAX = 2048
        if base % 128 == 0:
            L = f * 128 // math.gcd(f, 128)
            cand = [d for d in _divisors(base) if d % L == 0 and d <= PMAX]
            P = max(cand) if cand else (L if base % L == 0 else base)
        else:
            # Odd lane counts: fall back to a full-width y table (single
            # unmasked full-block store; y cos/sin not hoisted — corner case).
            P = base
        reps = base // P
        Wy = k * P

        # ---- generation-aware VMEM budget (counts resident inputs + temps).
        out_bytes = jnp.dtype(out_dtype).itemsize
        phys = _physical_vmem_bytes()
        vmem_limit = int(min(phys * 3 // 4, phys - 8 * 1024 * 1024))
        fixed = (2 * 8 * K * 4            # freqs_x row: 2 bufs, 8-sublane pad
                 + 2 * 2 * 8 * Wy * 4     # roff + invp rows
                 + (4 << 20))             # Mosaic internal scratch headroom
        per_row = (4 * 2 * K * out_bytes  # 4 outputs, double-buffered
                   + 2 * K * 4            # x broadcast temporaries (conservative)
                   + 3 * Wy * 4)          # y small tables
        budget = max(vmem_limit - fixed, per_row * 8)
        max_rows = max(8, (budget // per_row) // 8 * 8)
        # TODO(synk): for extreme w*f where even an 8-row tile exceeds VMEM,
        # add a second grid axis over lane columns.

        # ---- tile selection.
        if tile_g is None:
            tg = min(G, max_rows)
            if G >= 16:
                # >=2 grid steps so the parallel axis shards across v7x's 2 TCs.
                tg = min(tg, _round_up(-(-G // 2), 8))
            if tg < G:
                tg = max(8, (tg // 8) * 8)
                # Prefer an exact divisor only if it does NOT collapse the tile.
                div = [d for d in _divisors(G) if d % 8 == 0 and tg // 2 <= d <= tg]
                if div:
                    tg = max(div)
        else:
            tg = max(1, min(int(tile_g), G))
            if tg < G and tg % 8 != 0:
                tg = min(G, max(8, _round_up(tg, 8)))
        grid = (pl.cdiv(G, tg),)

        # ---- tiny precomputed resident rows (review item: fold xpos*inv_tiled).
        lane = np.arange(K, dtype=np.int64)
        fx_row = (((lane % base) // f).astype(np.float32)
                  * inv_np[lane % f]).reshape(1, K)               # j * inv[kf]
        m = np.arange(Wy, dtype=np.int64)
        roff = (m // P).astype(np.float32).reshape(1, Wy)          # stretch index r
        invp = inv_np[m % f].reshape(1, Wy)                        # inv[kf]

        kernel = _make_kernel(k, P, base, reps, jnp.dtype(out_dtype))
        resident = lambda shape: pl.BlockSpec(shape, lambda i: (0, 0))
        out_spec = pl.BlockSpec((tg, K), lambda i: (i, 0))
        out_shapes = tuple(
            jax.ShapeDtypeStruct((G, K), out_dtype) for _ in range(4))

        cos_x, sin_x, cos_y, sin_y = pl.pallas_call(
            kernel,
            out_shape=out_shapes,
            grid=grid,
            in_specs=[
                resident((1, K)),    # freqs_x lane row
                resident((1, Wy)),   # y stretch offsets
                resident((1, Wy)),   # lane-tiled inv_freq
            ],
            out_specs=tuple(out_spec for _ in range(4)),
            compiler_params=pltpu.CompilerParams(
                dimension_semantics=("parallel",),
                vmem_limit_bytes=vmem_limit,
            ),
        )(jnp.asarray(fx_row), jnp.asarray(roff), jnp.asarray(invp))

        # Free reshape to the PyTorch output layout (1, h, w, 1, f).
        rs = lambda a: a.reshape(1, h, w, 1, f)
        return rs(cos_x), rs(sin_x), rs(cos_y), rs(sin_y)


# ----------------------------------------------------------------------------- reference + tests
def _reference(inv_freq, h, w):
    y, x = jnp.meshgrid(jnp.arange(h), jnp.arange(w), indexing="ij")
    fx = x[..., None].astype(jnp.float32) * inv_freq
    fy = y[..., None].astype(jnp.float32) * inv_freq
    rs = lambda a: a.reshape(1, h, w, 1, -1)
    return (rs(jnp.cos(fx)), rs(jnp.sin(fx)), rs(jnp.cos(fy)), rs(jnp.sin(fy)))


def _check(rope, h, w, dim, tile_g=None, out_dtype=jnp.float32,
           atol=1e-5, rtol=1e-5):
    outs = jax.block_until_ready(rope(h, w, tile_g=tile_g, out_dtype=out_dtype))
    refs = _reference(rope.inv_freq, h, w)
    for o, r in zip(outs, refs):
        assert o.shape == (1, h, w, 1, dim // 4)
        assert o.dtype == jnp.dtype(out_dtype)
        np.testing.assert_allclose(np.asarray(o, dtype=np.float32),
                                   np.asarray(r, dtype=np.float32),
                                   atol=atol, rtol=rtol)


if __name__ == "__main__":
    key = jax.random.PRNGKey(0)  # module has no random parameters / inputs
    del key

    dim = 32                      # -> f = 8 frequencies
    rope = RotaryEmbedding2D(dim)

    # 1) Small grid: lane fold kicks in (w*f=128 -> k=4, K=512), single block.
    _check(rope, h=16, w=16, dim=dim)
    # 2) Ragged multi-step grid with fold (h=40 -> k=4, G=10, tile_g=8 -> 2
    #    steps, ragged last block clipped by Pallas).
    _check(rope, h=40, w=16, dim=dim, tile_g=8)
    # 3) No fold, slab replication (base=4096 -> P=2048, reps=2) and >=2 grid
    #    steps on the parallel axis (megacore path on v7x).
    _check(rope, h=32, w=512, dim=dim)
    # 4) Optional bf16 output contract (flag-gated), loose tolerance.
    _check(rope, h=16, w=16, dim=dim, out_dtype=jnp.bfloat16,
           atol=2e-2, rtol=2e-2)

    print("KERNEL_OK")
</pallas_src>

<mosaic_0001>
module attributes {stable_mosaic.version = 11 : i64} {
  func.func @kernel(%arg0: i32, %arg1: memref<1x512xf32, #tpu.memory_space<vmem>>, %arg2: memref<1x512xf32, #tpu.memory_space<vmem>>, %arg3: memref<1x512xf32, #tpu.memory_space<vmem>>, %arg4: memref<4x512xf32, #tpu.memory_space<vmem>>, %arg5: memref<4x512xf32, #tpu.memory_space<vmem>>, %arg6: memref<4x512xf32, #tpu.memory_space<vmem>>, %arg7: memref<4x512xf32, #tpu.memory_space<vmem>>) attributes {dimension_semantics = [#tpu.dimension_semantics<parallel>], iteration_bounds = array<i64: 1>, scalar_prefetch = 0 : i64, scratch_operands = 0 : i64, tpu.core_type = #tpu.core_type<tc>, window_params = [{pipeline_mode = #tpu.pipeline_mode<synchronous>, transform_indices = @transform_0, window_bounds = array<i64: 1, 512>}, {pipeline_mode = #tpu.pipeline_mode<synchronous>, transform_indices = @transform_1, window_bounds = array<i64: 1, 512>}, {pipeline_mode = #tpu.pipeline_mode<synchronous>, transform_indices = @transform_2, window_bounds = array<i64: 1, 512>}, {transform_indices = @transform_3, window_bounds = array<i64: 4, 512>}, {transform_indices = @transform_4, window_bounds = array<i64: 4, 512>}, {transform_indices = @transform_5, window_bounds = array<i64: 4, 512>}, {transform_indices = @transform_6, window_bounds = array<i64: 4, 512>}]} {
    %c0 = arith.constant 0 : index
    %c0_0 = arith.constant 0 : index
    %0 = vector.load %arg1[%c0, %c0_0] : memref<1x512xf32, #tpu.memory_space<vmem>>, vector<1x512xf32>
    %1 = math.cos %0 : vector<1x512xf32>
    %2 = vector.shape_cast %1 : vector<1x512xf32> to vector<1x512xf32>
    %3 = vector.broadcast %2 : vector<1x512xf32> to vector<4x512xf32>
    %c0_1 = arith.constant 0 : index
    %c0_2 = arith.constant 0 : index
    %4 = vector.load %arg4[%c0_1, %c0_2] : memref<4x512xf32, #tpu.memory_space<vmem>>, vector<4x512xf32>
    tpu.vector_store %arg4[%c0_1, %c0_2], %3 {strides = array<i32>} : memref<4x512xf32, #tpu.memory_space<vmem>>, vector<4x512xf32>,
    %5 = math.sin %0 : vector<1x512xf32>
    %6 = vector.shape_cast %5 : vector<1x512xf32> to vector<1x512xf32>
    %7 = vector.broadcast %6 : vector<1x512xf32> to vector<4x512xf32>
    %c0_3 = arith.constant 0 : index
    %c0_4 = arith.constant 0 : index
    %8 = vector.load %arg5[%c0_3, %c0_4] : memref<4x512xf32, #tpu.memory_space<vmem>>, vector<4x512xf32>
    tpu.vector_store %arg5[%c0_3, %c0_4], %7 {strides = array<i32>} : memref<4x512xf32, #tpu.memory_space<vmem>>, vector<4x512xf32>,
    %c4_i32 = arith.constant 4 : i32
    %9 = arith.muli %arg0, %c4_i32 : i32
    %10 = tpu.iota {dimensions = array<i32: 0>} : vector<4x1xi32>
    %11 = vector.broadcast %9 : i32 to vector<4x1xi32>
    %12 = arith.addi %11, %10 : vector<4x1xi32>
    %c4_i32_5 = arith.constant 4 : i32
    %13 = vector.broadcast %c4_i32_5 : i32 to vector<4x1xi32>
    %14 = arith.muli %12, %13 : vector<4x1xi32>
    %15 = arith.sitofp %14 : vector<4x1xi32> to vector<4x1xf32>
    %c0_6 = arith.constant 0 : index
    %c0_7 = arith.constant 0 : index
    %16 = vector.load %arg2[%c0_6, %c0_7] : memref<1x512xf32, #tpu.memory_space<vmem>>, vector<1x512xf32>
    %17 = vector.broadcast %15 : vector<4x1xf32> to vector<4x512xf32>
    %18 = vector.broadcast %16 : vector<1x512xf32> to vector<4x512xf32>
    %19 = arith.addf %17, %18 : vector<4x512xf32>
    %c0_8 = arith.constant 0 : index
    %c0_9 = arith.constant 0 : index
    %20 = vector.load %arg3[%c0_8, %c0_9] : memref<1x512xf32, #tpu.memory_space<vmem>>, vector<1x512xf32>
    %21 = vector.broadcast %20 : vector<1x512xf32> to vector<4x512xf32>
    %22 = arith.mulf %19, %21 : vector<4x512xf32>
    %23 = math.cos %22 : vector<4x512xf32>
    %24 = math.sin %22 : vector<4x512xf32>
    %c0_10 = arith.constant 0 : index
    %c0_11 = arith.constant 0 : index
    %25 = vector.load %arg6[%c0_10, %c0_11] : memref<4x512xf32, #tpu.memory_space<vmem>>, vector<4x512xf32>
    tpu.vector_store %arg6[%c0_10, %c0_11], %23 {strides = array<i32>} : memref<4x512xf32, #tpu.memory_space<vmem>>, vector<4x512xf32>,
    %c0_12 = arith.constant 0 : index
    %c0_13 = arith.constant 0 : index
    %26 = vector.load %arg7[%c0_12, %c0_13] : memref<4x512xf32, #tpu.memory_space<vmem>>, vector<4x512xf32>
    tpu.vector_store %arg7[%c0_12, %c0_13], %24 {strides = array<i32>} : memref<4x512xf32, #tpu.memory_space<vmem>>, vector<4x512xf32>,
    return
  }
  func.func @transform_0(%arg0: i32) -> (i32, i32) {
    %c0_i32 = arith.constant 0 : i32
    %c0_i32_0 = arith.constant 0 : i32
    %c0_i32_1 = arith.constant 0 : i32
    return %c0_i32, %c0_i32_0 : i32, i32
  }
  func.func @transform_1(%arg0: i32) -> (i32, i32) {
    %c0_i32 = arith.constant 0 : i32
    %c0_i32_0 = arith.constant 0 : i32
    %c0_i32_1 = arith.constant 0 : i32
    return %c0_i32, %c0_i32_0 : i32, i32
  }
  func.func @transform_2(%arg0: i32) -> (i32, i32) {
    %c0_i32 = arith.constant 0 : i32
    %c0_i32_0 = arith.constant 0 : i32
    %c0_i32_1 = arith.constant 0 : i32
    return %c0_i32, %c0_i32_0 : i32, i32
  }
  func.func @transform_3(%arg0: i32) -> (i32, i32) {
    %c0_i32 = arith.constant 0 : i32
    %c0_i32_0 = arith.constant 0 : i32
    return %arg0, %c0_i32 : i32, i32
  }
  func.func @transform_4(%arg0: i32) -> (i32, i32) {
    %c0_i32 = arith.constant 0 : i32
    %c0_i32_0 = arith.constant 0 : i32
    return %arg0, %c0_i32 : i32, i32
  }
  func.func @transform_5(%arg0: i32) -> (i32, i32) {
    %c0_i32 = arith.constant 0 : i32
    %c0_i32_0 = arith.constant 0 : i32
    return %arg0, %c0_i32 : i32, i32
  }
  func.func @transform_6(%arg0: i32) -> (i32, i32) {
    %c0_i32 = arith.constant 0 : i32
    %c0_i32_0 = arith.constant 0 : i32
    return %arg0, %c0_i32 : i32, i32
  }
}

</mosaic_0001>

<bundles_post_ra>
// kernel: tpu_custom_call.1
= control target key start
LH: loop header
LB: loop body
LE: loop exit
PB: predicated region body
PF: predicated region fallthrough
CT: control target
= control target key end

     0   :  { %12 = vsyncpa [#allocation3], 0  ;;  %s2171_s0 = inlined_call_operand.hbm [shape: f32[1,512], index: 0, kind: input, shape index: {}]   ;;  %s2172_s1 = inlined_call_operand.hbm [shape: f32[1,512], index: 1, kind: input, shape index: {}]   ;;  %s2173_s2 = inlined_call_operand.vmem [shape: f32[1,512], index: 2, kind: input, shape index: {}]   ;;  %s2174_s3 = inlined_call_operand.hbm [shape: f32[4,512], index: 3, kind: output, shape index: {0}]   ;;  %s2175_s4 = inlined_call_operand.hbm [shape: f32[4,512], index: 4, kind: output, shape index: {1}]   ;;  %s2176_s5 = inlined_call_operand.hbm [shape: f32[4,512], index: 5, kind: output, shape index: {2}]   ;;  %s2177_s6 = inlined_call_operand.hbm [shape: f32[4,512], index: 6, kind: output, shape index: {3}]  }
   0x1   :  { %13 = vsyncpa [#allocation6], 0 }
   0x2   :  { %14 = vsyncpa [#allocation4], 0 }
   0x3   :  { %15 = vsyncpa [#allocation9], 0 }
   0x4   :  { %16 = vsyncpa [#allocation12], 0  ;;  %s1497_s21 = smov [#allocation2]   ;;  %s1498_s23 = smov [#allocation5]  }
   0x5   :  { %s23_s22 = sshll.u32 %s1497_s21, 4  ;;  %s33_s24 = sshll.u32 %s1498_s23, 4  ;;  %s24_s22 = int_to_ptr.vmem [resolvable:$true] %s23_s22  ;;  %s34_s24 = int_to_ptr.vmem [resolvable:$true] %s33_s24 }
   0x6   :  { %s1355_s27 = scalar_lea.hbm %s2171_s0, 64 }
   0x7   :  { %p1356_p0 = scmp.ne.s32.totalorder %s2171_s0, %s1355_s27  ;;  %p1359_p1 = scmp.lt.u32.totalorder %s1355_s27, %s2171_s0 }
   0x9   :  { %p1361_p2 = pnand %p1359_p1, %p1356_p0 }
   0xb   :  { %1364 = shalt.err (!%p1361_p2)
}
   0xc   :  { %s1365_s8 = scalar_lea.vmem %s24_s22, 64  ;;  %p1370_p4 = scmp.lt.s32.totalorder %s24_s22, %s24_s22 }
   0xd   :  { %p1366_p3 = scmp.ne.s32.totalorder %s24_s22, %s1365_s8  ;;  %p1371_p5 = scmp.lt.s32.totalorder %s1365_s8, %s1365_s8 }
   0xf   :  { %p1372_p6 = por %p1371_p5, %p1370_p4 }
  0x11   :  { %p1373_p7 = pnand %p1372_p6, %p1366_p3 }
  0x13   :  { %1376 = shalt.err (!%p1373_p7)
}
  0x14   :  { %26 = dma.hbm_to_vmem [thread:$0]  %s2171_s0, 64, %s24_s22, [#allocation3]  }
  0x15   :  { %s1377_s13 = scalar_lea.hbm %s2172_s1, 64 }
  0x16   :  { %p1378_p8 = scmp.ne.s32.totalorder %s2172_s1, %s1377_s13  ;;  %p1381_p9 = scmp.lt.u32.totalorder %s1377_s13, %s2172_s1 }
  0x18   :  { %p1383_p10 = pnand %p1381_p9, %p1378_p8 }
  0x1a   :  { %1386 = shalt.err (!%p1383_p10)
}
  0x1b   :  { %s1387_s18 = scalar_lea.vmem %s34_s24, 64  ;;  %p1392_p12 = scmp.lt.s32.totalorder %s34_s24, %s34_s24 }
  0x1c   :  { %p1388_p11 = scmp.ne.s32.totalorder %s34_s24, %s1387_s18  ;;  %p1393_p13 = scmp.lt.s32.totalorder %s1387_s18, %s1387_s18 }
  0x1e   :  { %p1394_p0 = por %p1393_p13, %p1392_p12 }
  0x20   :  { %p1395_p1 = pnand %p1394_p0, %p1388_p11 }
  0x22   :  { %1398 = shalt.err (!%p1395_p1)
}
  0x23   :  { %36 = dma.hbm_to_vmem [thread:$0]  %s2172_s1, 64, %s34_s24, [#allocation6]  }
  0x24   :  { %1487 = dma.done.wait [#allocation3], 64  }
  0x25   :  { %1488 = vsyncadd [#allocation3], 4294967232 }
  0x26   :  { %1489 = dma.done.wait [#allocation6], 64  }
  0x27   :  { %1490 = vsyncadd [#allocation6], 4294967232  ;;  %v150_v0 = vlaneseq  ;;  %v1577_v5 = vld [vmem:[#allocation2] sm:$0xf]  ;;  %v1579_v6 = vld [vmem:[#allocation5] sm:$0xf] }
  0x28   :  { %v1586_v8 = vld [vmem:[%s2173_s2] sm:$0xf]  ;;  %v46_v9 = vand.u32 2147483647, %v1577_v5  ;;  %v49_v10 = vand.u32 2139095040, %v1577_v5  ;;  %vm48_vm13 = vcmp.lt.s32.totalorder %v1577_v5, 0 }
  0x29   :  { %v1568_v1 = vshrl.u32 %v150_v0, 7  ;;  %v1499_v35 = vmov 683565275   ;;  %v1500_v37 = vmov 2475754826   ;;  %s1505_s2 = smov [#allocation8]  }
  0x2a   :  { %v50_v13 = vshrl.u32 %v49_v10, 23  ;;  %v53_v15 = vand.u32 8388607, %v46_v9  ;;  %v1501_v39 = vmov 2131351028   ;;  %s1222_s21 = sshll.u32 %s1505_s2, 4  ;;  %s1898_s21 = int_to_ptr.vmem [resolvable:$true] %s1222_s21 }
  0x2b   :  { %v1571_v2 = vsub.s32 0, %v1568_v1  ;;  %v1574_v3 = vsub.s32 1, %v1568_v1  ;;  %v304_v4 = vmul.u32 4, %v1568_v1  ;;  %v1502_v41 = vmov 2102212464   ;;  %s1506_s22 = smov [#allocation7]   ;;  %p1404_p3 = scmp.lt.s32.totalorder %s1898_s21, %s1898_s21 }
  0x2c   :  { %v1263_v19 = vadd.s32 4294967169, %v50_v13  ;;  %v54_v23 = vor.u32 8388608, %v53_v15  ;;  %v1503_v43 = vmov 920167782   ;;  %v1504_v52 = vmov 1326507024  }
  0x2d   :  { %v1581_v7 = vcvt.s32.f32 %v304_v4  ;;  %v311_v11 = vrot.slane %v1579_v6, %v1571_v2  ;;  %v315_v12 = vrot.slane %v1579_v6, %v1574_v3  ;;  %v337_v14 = vrot.slane %v1586_v8, %v1571_v2  ;;  %s1212_s23 = sshll.u32 %s1506_s22, 4  ;;  %s1399_s24 = scalar_lea.vmem %s1898_s21, 256  ;;  %s1902_s23 = int_to_ptr.vmem [resolvable:$true] %s1212_s23 }
  0x2e   :  { %v341_v18 = vrot.slane %v1586_v8, %v1574_v3  ;;  %v56_v22 = vadd.s32 1, %v1263_v19  ;;  %v1611_v32 = vshll.u32 %v54_v23, 8  ;;  %vm1722_vm14 = vcmp.le.f32.partialorder %v46_v9, 0.7853982  ;;  %p1400_p2 = scmp.ne.s32.totalorder %s1898_s21, %s1399_s24  ;;  %p1405_p4 = scmp.lt.s32.totalorder %s1399_s24, %s1399_s24 }
  0x2f   :  { %v328_v16 = vadd.f32 %v311_v11, %v1581_v7  ;;  %v329_v17 = vadd.f32 %v315_v12, %v1581_v7 }
  0x30   :  { %vm57_vm0 = vcmp.gt.s32.totalorder %v56_v22, 0  ;;  %p1406_p5 = por %p1405_p4, %p1404_p3 }
  0x31   :  { %v1602_v20 = vmul.f32 %v337_v14, %v328_v16  ;;  %v1604_v21 = vmul.f32 %v341_v18, %v329_v17  ;;  %v58_v26 = vsel %vm57_vm0, %v56_v22, 0 }
  0x32   :  { %v60_v30 = vand.u32 31, %v58_v26  ;;  %v59_v31 = vshrl.u32 %v58_v26, 5  ;;  %v1637_v26 = vsub.s32 2, %v1568_v1  ;;  %p1407_p6 = pnand %p1406_p5, %p1400_p2 }
  0x33   :  { %v358_v24 = vand.u32 2147483647, %v1602_v20  ;;  %v361_v25 = vand.u32 2139095040, %v1602_v20  ;;  %v464_v29 = vand.u32 2139095040, %v1604_v21 }
  0x34   :  { %v61_v34 = vsub.s32 32, %v60_v30  ;;  %v63_v36 = vshll.u32 %v1499_v35, %v60_v30  ;;  %v66_v38 = vshll.u32 %v1500_v37, %v60_v30  ;;  %v69_v40 = vshll.u32 %v1501_v39, %v60_v30 }
  0x35   :  { %v362_v27 = vshrl.u32 %v361_v25, 23  ;;  %v365_v28 = vand.u32 8388607, %v358_v24  ;;  %v72_v42 = vshll.u32 %v1502_v41, %v60_v30  ;;  %v75_v44 = vshll.u32 %v1503_v43, %v60_v30 }
  0x36   :  { %v465_v46 = vshrl.u32 %v464_v29, 23  ;;  %v62_v47 = vshrl.u32 %v1499_v35, %v61_v34  ;;  %v64_v48 = vshrl.u32 %v1500_v37, %v61_v34  ;;  %v67_v49 = vshrl.u32 %v1501_v39, %v61_v34 }
  0x37   :  { %v1271_v33 = vadd.s32 4294967169, %v362_v27  ;;  %v366_v45 = vor.u32 8388608, %v365_v28  ;;  %v70_v50 = vshrl.u32 %v1502_v41, %v61_v34  ;;  %v73_v51 = vshrl.u32 %v1503_v43, %v61_v34 }
  0x38   :  { %v76_v53 = vshrl.u32 %v1504_v52, %v61_v34  ;;  %vm78_vm1 = vcmp.lt.s32.totalorder %v59_v31, 1  ;;  %vm81_vm2 = vcmp.lt.s32.totalorder %v59_v31, 4  ;;  %v65_v54 = vor.u32 %v64_v48, %v63_v36 }
  0x39   :  { %v68_v55 = vor.u32 %v67_v49, %v66_v38  ;;  %v71_v56 = vor.u32 %v70_v50, %v69_v40  ;;  %v368_v57 = vadd.s32 1, %v1271_v33  ;;  %v74_v58 = vor.u32 %v73_v51, %v72_v42 }
  0x3a   :  { %v77_v59 = vor.u32 %v76_v53, %v75_v44  ;;  %vm79_vm3 = vcmp.lt.s32.totalorder %v59_v31, 2  ;;  %vm80_vm4 = vcmp.lt.s32.totalorder %v59_v31, 3  ;;  %v82_v60 = vsel %vm78_vm1, %v62_v47, %v65_v54 }
  0x3b   :  { %v83_v61 = vsel %vm81_vm2, %v71_v56, 2102212464  ;;  %v86_v62 = vsel %vm78_vm1, %v65_v54, %v68_v55  ;;  %v90_v63 = vsel %vm78_vm1, %v68_v55, %v71_v56  ;;  %v87_v4 = vsel %vm81_vm2, %v74_v58, 920167782 }
  0x3c   :  { %v84_v0 = vsel %vm80_vm4, %v68_v55, %v83_v61  ;;  %v91_v10 = vsel %vm81_vm2, %v77_v59, 1326507024  ;;  %vm369_vm5 = vcmp.gt.s32.totalorder %v368_v57, 0  ;;  %v88_v11 = vsel %vm80_vm4, %v71_v56, %v87_v4 }
  0x3d   :  { %v92_v12 = vsel %vm80_vm4, %v74_v58, %v91_v10  ;;  %v370_v13 = vsel %vm369_vm5, %v368_v57, 0  ;;  %v1275_v14 = vadd.s32 4294967169, %v465_v46  ;;  %v85_v15 = vsel %vm79_vm3, %v82_v60, %v84_v0 }
  0x3e   :  { %v89_v16 = vsel %vm79_vm3, %v86_v62, %v88_v11  ;;  %v93_v17 = vsel %vm79_vm3, %v90_v63, %v92_v12  ;;  %v371_v18 = vshrl.u32 %v370_v13, 5  ;;  %v1640_v27 = vsub.s32 3, %v1568_v1 }
  0x3f   :  { %v1628_v19 = vmul.u32.u64.low %v1611_v32, %v93_v17  ;;  %v1629_v22 = vmul.u32.u64.high %v1611_v32, %v93_v17, %v1628_v19  ;;  %v1632_v23 = vmul.u32.u64.low %v1611_v32, %v89_v16  ;;  %v1633_v25 = vmul.u32.u64.high %v1611_v32, %v89_v16, %v1632_v23 }
  0x40   :  { %v372_v28 = vand.u32 31, %v370_v13  ;;  %v101_v29 = vmul.u32 %v1611_v32, %v85_v15  ;;  %vm390_vm6 = vcmp.lt.s32.totalorder %v371_v18, 1  ;;  %vm393_vm7 = vcmp.lt.s32.totalorder %v371_v18, 4 }
  0x41   :  { %v1643_v30 = vshll.u32 %v366_v45, 8  ;;  %vm103_vm8 = vc.u32 %v1629_v22, %v1632_v23  ;;  %v104_v1 = vadd.s32 1, %v1633_v25  ;;  %v471_v40 = vadd.s32 1, %v1275_v14 }
  0x42   :  { %v373_v31 = vsub.s32 32, %v372_v28  ;;  %v375_v33 = vshll.u32 %v1499_v35, %v372_v28  ;;  %v378_v34 = vshll.u32 %v1500_v37, %v372_v28  ;;  %v381_v36 = vshll.u32 %v1501_v39, %v372_v28 }
  0x43   :  { %v384_v38 = vshll.u32 %v1502_v41, %v372_v28  ;;  %v105_v46 = vsel %vm103_vm8, %v104_v1, %v1633_v25  ;;  %v387_v48 = vshll.u32 %v1503_v43, %v372_v28  ;;  %vm391_vm9 = vcmp.lt.s32.totalorder %v371_v18, 2 }
  0x44   :  { %v374_v32 = vshrl.u32 %v1499_v35, %v373_v31  ;;  %v376_v42 = vshrl.u32 %v1500_v37, %v373_v31  ;;  %v379_v44 = vshrl.u32 %v1501_v39, %v373_v31  ;;  %v382_v45 = vshrl.u32 %v1502_v41, %v373_v31 }
  0x45   :  { %v385_v47 = vshrl.u32 %v1503_v43, %v373_v31  ;;  %v388_v49 = vshrl.u32 %v1504_v52, %v373_v31  ;;  %v106_v50 = vadd.s32 %v105_v46, %v101_v29  ;;  %vm392_vm10 = vcmp.lt.s32.totalorder %v371_v18, 3 }
  0x46   :  { %v377_v51 = vor.u32 %v376_v42, %v375_v33  ;;  %v380_v53 = vor.u32 %v379_v44, %v378_v34  ;;  %v383_v54 = vor.u32 %v382_v45, %v381_v36  ;;  %vm472_vm11 = vcmp.gt.s32.totalorder %v471_v40, 0 }
  0x47   :  { %v386_v55 = vor.u32 %v385_v47, %v384_v38  ;;  %v389_v56 = vor.u32 %v388_v49, %v387_v48  ;;  %v107_v57 = vadd.s32 536870912, %v106_v50  ;;  %v461_v63 = vand.u32 2147483647, %v1604_v21 }
  0x48   :  { %v395_v58 = vsel %vm393_vm7, %v383_v54, 2102212464  ;;  %v398_v59 = vsel %vm390_vm6, %v377_v51, %v380_v53  ;;  %v402_v61 = vsel %vm390_vm6, %v380_v53, %v383_v54  ;;  %v394_v4 = vsel %vm390_vm6, %v374_v32, %v377_v51 }
  0x49   :  { %v399_v60 = vsel %vm393_vm7, %v386_v55, 920167782  ;;  %v403_v62 = vsel %vm393_vm7, %v389_v56, 1326507024  ;;  %v1666_v0 = vshrl.u32 %v107_v57, 30  ;;  %v396_v12 = vsel %vm392_vm10, %v380_v53, %v395_v58 }
  0x4a   :  { %v400_v10 = vsel %vm392_vm10, %v383_v54, %v399_v60  ;;  %v404_v11 = vsel %vm392_vm10, %v386_v55, %v403_v62  ;;  %v473_v15 = vsel %vm472_vm11, %v471_v40, 0  ;;  %v319_v17 = vrot.slane %v1579_v6, %v1637_v26 }
  0x4b   :  { %v401_v13 = vsel %vm391_vm9, %v398_v59, %v400_v10  ;;  %v405_v14 = vsel %vm391_vm9, %v402_v61, %v404_v11  ;;  %v109_v16 = vshll.u32 %v1666_v0, 30  ;;  %v323_v28 = vrot.slane %v1579_v6, %v1640_v27 }
  0x4c   :  { %v1675_v19 = vmul.u32.u64.low %v1643_v30, %v405_v14  ;;  %v1676_v25 = vmul.u32.u64.high %v1643_v30, %v405_v14, %v1675_v19  ;;  %v1681_v29 = vmul.u32.u64.low %v1643_v30, %v401_v13  ;;  %v1682_v31 = vmul.u32.u64.high %v1643_v30, %v401_v13, %v1681_v29 }
  0x4d   :  { %v475_v33 = vand.u32 31, %v473_v15  ;;  %v1685_v34 = vsub.s32 %v106_v50, %v109_v16  ;;  %v397_v36 = vsel %vm391_vm9, %v394_v4, %v396_v12  ;;  %v468_v1 = vand.u32 8388607, %v461_v63 }
  0x4e   :  { %v330_v32 = vadd.f32 %v319_v17, %v1581_v7  ;;  %v413_v6 = vmul.u32 %v1643_v30, %v397_v36  ;;  %vm415_vm12 = vc.u32 %v1676_v25, %v1681_v29  ;;  %v416_v42 = vadd.s32 1, %v1682_v31 }
  0x4f   :  { %v476_v38 = vsub.s32 32, %v475_v33  ;;  %v112_v40 = vsub.s32 0, %v1685_v34  ;;  %v1697_v44 = vadd.f32 %v323_v28, %v1581_v7  ;;  %v469_v45 = vor.u32 8388608, %v468_v1 }
  0x50   :  { %v345_v46 = vrot.slane %v1586_v8, %v1637_v26  ;;  %v349_v47 = vrot.slane %v1586_v8, %v1640_v27  ;;  %v102_v30 = vadd.s32 %v1632_v23, %v1629_v22  ;;  %v417_v48 = vsel %vm415_vm12, %v416_v42, %v1682_v31 }
  0x51   :  { %v1264_v18 = vmin.u32 %v112_v40, %v1685_v34  ;;  %v478_v49 = vshll.u32 %v1499_v35, %v475_v33  ;;  %v479_v50 = vshrl.u32 %v1500_v37, %v476_v38  ;;  %v132_v51 = vsub.s32 4, %v1666_v0 }
  0x52   :  { %v481_v53 = vshll.u32 %v1500_v37, %v475_v33  ;;  %v482_v54 = vshrl.u32 %v1501_v39, %v476_v38  ;;  %v418_v55 = vadd.s32 %v417_v48, %v413_v6  ;;  %v474_v8 = vshrl.u32 %v473_v15, 5 }
  0x53   :  { %v114_v7 = vclz %v1264_v18  ;;  %v484_v56 = vshll.u32 %v1501_v39, %v475_v33  ;;  %v485_v22 = vshrl.u32 %v1502_v41, %v476_v38  ;;  %v477_v57 = vshrl.u32 %v1499_v35, %v476_v38 }
  0x54   :  { %v487_v58 = vshll.u32 %v1502_v41, %v475_v33  ;;  %v488_v59 = vshrl.u32 %v1503_v43, %v476_v38  ;;  %v419_v60 = vadd.s32 536870912, %v418_v55  ;;  %v480_v61 = vor.u32 %v479_v50, %v478_v49 }
  0x55   :  { %v1265_v23 = vadd.s32 4294967294, %v114_v7  ;;  %v490_v62 = vshll.u32 %v1503_v43, %v475_v33  ;;  %v491_v4 = vshrl.u32 %v1504_v52, %v476_v38  ;;  %v483_v11 = vor.u32 %v482_v54, %v481_v53 }
  0x56   :  { %v486_v12 = vor.u32 %v485_v22, %v484_v56  ;;  %v489_v13 = vor.u32 %v488_v59, %v487_v58  ;;  %v1726_v15 = vshrl.u32 %v419_v60, 30  ;;  %vm493_vm0 = vcmp.lt.s32.totalorder %v474_v8, 1 }
  0x57   :  { %vm1266_vm15 = vcmp.lt.s32.totalorder %v1265_v23, 0  ;;  %vm496_vm1 = vcmp.lt.s32.totalorder %v474_v8, 4  ;;  %vm495_vm2 = vcmp.lt.s32.totalorder %v474_v8, 3  ;;  %v492_v9 = vor.u32 %v491_v4, %v490_v62 }
  0x58   :  { %v117_v14 = vsel %vm1266_vm15, 0, %v1265_v23  ;;  %v421_v28 = vshll.u32 %v1726_v15, 30  ;;  %vm494_vm3 = vcmp.lt.s32.totalorder %v474_v8, 2  ;;  %v1730_v31 = vmul.f32 %v345_v46, %v330_v32 }
  0x59   :  { %v118_v16 = vsub.s32 32, %v117_v14  ;;  %v119_v17 = vshll.u32 %v1685_v34, %v117_v14  ;;  %v122_v19 = vsub.s32 4294967266, %v117_v14  ;;  %v501_v1 = vsel %vm493_vm0, %v480_v61, %v483_v11 }
  0x5a   :  { %v502_v38 = vsel %vm496_vm1, %v489_v13, 920167782  ;;  %v1734_v40 = vsub.s32 %v418_v55, %v421_v28  ;;  %v498_v6 = vsel %vm496_vm1, %v486_v12, 2102212464  ;;  %v509_v42 = vshll.u32 %v469_v45, 8 }
  0x5b   :  { %v120_v33 = vshrl.u32 %v102_v30, %v118_v16  ;;  %v123_v36 = vadd.s32 127, %v122_v19  ;;  %v503_v34 = vsel %vm495_vm2, %v486_v12, %v502_v38  ;;  %v133_v32 = vsel %vm48_vm13, %v132_v51, %v1666_v0 }
  0x5c   :  { %v497_v46 = vsel %vm493_vm0, %v477_v57, %v480_v61  ;;  %v424_v30 = vsub.s32 0, %v1734_v40  ;;  %v504_v49 = vsel %vm494_vm3, %v501_v1, %v503_v34  ;;  %v505_v50 = vsel %vm493_vm0, %v483_v11, %v486_v12 }
  0x5d   :  { %v121_v18 = vor.u32 %v120_v33, %v119_v17  ;;  %v124_v48 = vshll.u32 %v123_v36, 23  ;;  %v506_v7 = vsel %vm496_vm1, %v492_v9, 1326507024  ;;  %v499_v45 = vsel %vm495_vm2, %v483_v11, %v498_v6 }
  0x5e   :  { %v507_v55 = vsel %vm495_vm2, %v489_v13, %v506_v7  ;;  %v135_v56 = vsel %vm1722_vm14, 0, %v133_v32  ;;  %v1272_v0 = vmin.u32 %v424_v30, %v1734_v40  ;;  %v1752_v51 = vmul.f32 %v349_v47, %v1697_v44 }
  0x5f   :  { %v125_v53 = vor.u32 4788187, %v124_v48  ;;  %v128_v54 = vcvt.s32.f32 %v121_v18  ;;  %v564_v22 = vand.u32 2147483647, %v1730_v31  ;;  %v508_v57 = vsel %vm494_vm3, %v505_v50, %v507_v55 }
  0x60   :  { %v1756_v58 = vmul.u32.u64.low %v509_v42, %v504_v49  ;;  %v1757_v59 = vmul.u32.u64.high %v509_v42, %v504_v49, %v1756_v58  ;;  %v426_v60 = vclz %v1272_v0  ;;  %v500_v61 = vsel %vm494_vm3, %v497_v46, %v499_v45 }
  0x61   :  { %v126_v23 = vand.u32 2147483647, %v125_v53  ;;  %v1761_v62 = vmul.u32.u64.low %v509_v42, %v508_v57  ;;  %v1762_v4 = vmul.u32.u64.high %v509_v42, %v508_v57, %v1761_v62  ;;  %v265_v12 = vadd.s32 3, %v135_v56 }
  0x62   :  { %vm360_vm4 = vcmp.lt.s32.totalorder %v1602_v20, 0  ;;  %v567_v44 = vand.u32 2139095040, %v1730_v31  ;;  %v1766_v47 = vand.u32 3, %v135_v56  ;;  %v414_v13 = vadd.s32 %v1681_v29, %v1676_v25 }
  0x63   :  { %v129_v11 = vmul.f32 %v128_v54, %v126_v23  ;;  %v1273_v14 = vadd.s32 4294967294, %v426_v60  ;;  %v444_v16 = vsub.s32 4, %v1726_v15  ;;  %vm1773_vm5 = vcmp.le.f32.partialorder %v358_v24, 0.7853982 }
  0x64   :  { %v516_v19 = vmul.u32 %v509_v42, %v500_v61  ;;  %v519_v28 = vadd.s32 1, %v1757_v59  ;;  %v568_v9 = vshrl.u32 %v567_v44, 23  ;;  %vm518_vm7 = vc.u32 %v1762_v4, %v1756_v58 }
  0x65   :  { %v130_v17 = vxor.u32 2147483648, %v129_v11  ;;  %vm1274_vm6 = vcmp.lt.s32.totalorder %v1273_v14, 0  ;;  %v571_v25 = vand.u32 8388607, %v564_v22  ;;  %v670_v29 = vand.u32 2139095040, %v1752_v51 }
  0x66   :  { %v429_v24 = vsel %vm1274_vm6, 0, %v1273_v14  ;;  %v520_v36 = vsel %vm518_vm7, %v519_v28, %v1757_v59  ;;  %v1279_v1 = vadd.s32 4294967169, %v568_v9  ;;  %v1790_v18 = vand.u32 3, %v265_v12 }
  0x67   :  { %v131_v33 = vsel %vm48_vm13, %v130_v17, %v129_v11  ;;  %v430_v6 = vsub.s32 32, %v429_v24  ;;  %v431_v34 = vshll.u32 %v1734_v40, %v429_v24  ;;  %v434_v42 = vsub.s32 4294967266, %v429_v24 }
  0x68   :  { %v134_v38 = vsel %vm1722_vm14, %v1577_v5, %v131_v33  ;;  %v521_v48 = vadd.s32 %v520_v36, %v516_v19  ;;  %v574_v32 = vadd.s32 1, %v1279_v1  ;;  %v445_v49 = vsel %vm360_vm4, %v444_v16, %v1726_v15 }
  0x69   :  { %1335 = vcosq.f32 %v134_v38  ;;  %v432_v46 = vshrl.u32 %v414_v13, %v430_v6  ;;  %v435_v30 = vadd.s32 127, %v434_v42  ;;  %vm144_vm8 = vcmp.eq.s32.totalorder %v1766_v47, 2 }
  0x6a   :  { %1337 = vsinq.f32 %v134_v38  ;;  %v522_v10 = vadd.s32 536870912, %v521_v48  ;;  %vm575_vm9 = vcmp.gt.s32.totalorder %v574_v32, 0  ;;  %v667_v50 = vand.u32 2147483647, %v1752_v51 }
  0x6b   :  { %v671_v40 = vshrl.u32 %v670_v29, 23  ;;  %vm141_vm10 = vcmp.eq.s32.totalorder %v1766_v47, 0  ;;  %v433_v7 = vor.u32 %v432_v46, %v431_v34  ;;  %v436_v53 = vshll.u32 %v435_v30, 23 }
  0x6c   :  { %v572_v54 = vor.u32 8388608, %v571_v25  ;;  %v576_v45 = vsel %vm575_vm9, %v574_v32, 0  ;;  %vm267_vm11 = vcmp.lt.s32.totalorder %v1790_v18, 2  ;;  %vm268_vm12 = vcmp.eq.s32.totalorder %v1790_v18, 0 }
  0x6d   :  { %vm140_vm13 = vcmp.lt.s32.totalorder %v1766_v47, 2  ;;  %v1801_v15 = vshrl.u32 %v522_v10, 30  ;;  %v1803_v55 = vand.u32 31, %v576_v45  ;;  %vm138_vm14 = vweird.f32 %v1577_v5 }
  0x6e   :  { %vm271_vm15 = vcmp.eq.s32.totalorder %v1790_v18, 2  ;;  %v437_v56 = vor.u32 4788187, %v436_v53  ;;  %v440_v0 = vcvt.s32.f32 %v433_v7  ;;  %v1809_v23 = vsel %vm1773_vm5, 0, %v445_v49 }
  0x6f   :  { %v1812_v57 = vand.u32 3, %v1809_v23  ;;  %v524_v59 = vshll.u32 %v1801_v15, 30  ;;  %v1816_v60 = vsub.s32 32, %v1803_v55  ;;  %v1283_v61 = vadd.s32 4294967169, %v671_v40 }
  0x70   :  { %v438_v62 = vand.u32 2147483647, %v437_v56  ;;  %v1820_v11 = vadd.s32 %v1756_v58, %v1762_v4  ;;  %v1822_v12 = vshll.u32 %v572_v54, 8  ;;  %v1826_v44 = vand.u32 8388607, %v667_v50 }
  0x71   :  { %v1828_v13 = vsub.s32 %v521_v48, %v524_v59  ;;  %v581_v14 = vshll.u32 %v1499_v35, %v1803_v55  ;;  %v582_v16 = vshrl.u32 %v1500_v37, %v1816_v60  ;;  %v584_v17 = vshll.u32 %v1500_v37, %v1803_v55 }
  0x72   :  { %v441_v19 = vmul.f32 %v440_v0, %v438_v62  ;;  %v585_v58 = vshrl.u32 %v1501_v39, %v1816_v60  ;;  %v587_v4 = vshll.u32 %v1501_v39, %v1803_v55  ;;  %v588_v28 = vshrl.u32 %v1502_v41, %v1816_v60 }
  0x73   :  { %v1336_v9 = vpop.eup %1335  ;;  %v527_v25 = vsub.s32 0, %v1828_v13  ;;  %v1843_v29 = vshrl.u32 %v576_v45, 5  ;;  %v590_v33 = vshll.u32 %v1502_v41, %v1803_v55  ;;  %v1847_v24 = vadd.s32 1, %v1283_v61 }
  0x74   :  { %v1338_v36 = vpop.eup %1337  ;;  %v145_v1 = vxor.u32 2147483648, %v1336_v9  ;;  %v442_v38 = vxor.u32 2147483648, %v441_v19  ;;  %v1851_v6 = vshrl.u32 %v1499_v35, %v1816_v60  ;;  %v591_v34 = vshrl.u32 %v1503_v43, %v1816_v60 }
  0x75   :  { %v142_v42 = vxor.u32 2147483648, %v1338_v36  ;;  %v1276_v48 = vmin.u32 %v527_v25, %v1828_v13  ;;  %v1856_v32 = vor.u32 %v582_v16, %v581_v14  ;;  %v1858_v46 = vor.u32 %v585_v58, %v584_v17 }
  0x76   :  { %v273_v30 = vsel %vm271_vm15, %v145_v1, %v1338_v36  ;;  %v146_v49 = vsel %vm144_vm8, %v145_v1, %v1338_v36  ;;  %v443_v10 = vsel %vm360_vm4, %v442_v38, %v441_v19  ;;  %v1866_v40 = vor.u32 %v588_v28, %v587_v4 }
  0x77   :  { %v270_v7 = vsel %vm268_vm12, %v1336_v9, %v142_v42  ;;  %v143_v53 = vsel %vm141_vm10, %v1336_v9, %v142_v42  ;;  %v446_v54 = vsel %vm1773_vm5, %v1602_v20, %v443_v10  ;;  %v529_v45 = vclz %v1276_v48 }
  0x78   :  { %v274_v56 = vsel %vm267_vm11, %v270_v7, %v273_v30  ;;  %v147_v0 = vsel %vm140_vm13, %v143_v53, %v146_v49  ;;  %1339 = vcosq.f32 %v446_v54  ;;  %v1879_v59 = vor.u32 %v591_v34, %v590_v33 }
  0x79   :  { %v275_v61 = vsel %vm138_vm14, nan, %v274_v56  ;;  %v148_v62 = vsel %vm138_vm14, nan, %v147_v0  ;;  %1341 = vsinq.f32 %v446_v54  ;;  %v1277_v14 = vadd.s32 4294967294, %v529_v45 }
  0x7a   :  { %v280_v8 = vrot.slane %v275_v61, %v1571_v2  ;;  %v284_v18 = vrot.slane %v275_v61, %v1574_v3  ;;  %v288_v47 = vrot.slane %v275_v61, %v1637_v26  ;;  %v292_v16 = vrot.slane %v275_v61, %v1640_v27 }
  0x7b   :  { %vm463_vm0 = vcmp.lt.s32.totalorder %v1604_v21, 0  ;;  %v153_v17 = vrot.slane %v148_v62, %v1571_v2  ;;  %v157_v5 = vrot.slane %v148_v62, %v1574_v3  ;;  %v161_v19 = vrot.slane %v148_v62, %v1637_v26 }
  0x7c   :  { %v165_v58 = vrot.slane %v148_v62, %v1640_v27  ;;  %v293_v4 = vcombine.low %v280_v8, %v284_v18  ;;  %v294_v28 = vcombine.low %v288_v47, %v292_v16  ;;  %vm1278_vm1 = vcmp.lt.s32.totalorder %v1277_v14, 0 }
  0x7d   :  { %v1896_v9 = vshll.u32 %v1503_v43, %v1803_v55  ;;  %v166_v25 = vcombine.low %v153_v17, %v157_v5  ;;  %v532_v36 = vsel %vm1278_vm1, 0, %v1277_v14  ;;  %v594_v2 = vshrl.u32 %v1504_v52, %v1816_v60 }
  0x7e   :  { %v167_v33 = vcombine.low %v161_v19, %v165_v58  ;;  %297 = vst [vmem:[#allocation8] sm:$0xff] %v293_v4  ;;  %298 = vst [vmem:[#allocation8 + $0x8] sm:$0xff] %v294_v28  ;;  %vm456_vm2 = vcmp.eq.s32.totalorder %v1812_v57, 2  ;;  %v533_v3 = vsub.s32 32, %v532_v36  ;;  %v534_v26 = vshll.u32 %v1828_v13, %v532_v36 }
  0x7f   :  { %v537_v27 = vsub.s32 4294967266, %v532_v36  ;;  %vm596_vm3 = vcmp.lt.s32.totalorder %v1843_v29, 1  ;;  %170 = vst [vmem:[#allocation7] sm:$0xff] %v166_v25  ;;  %vm1909_vm4 = vcmp.le.f32.partialorder %v461_v63, 0.7853982  ;;  %v547_v60 = vsub.s32 4, %v1801_v15 }
  0x80   :  { %171 = vst [vmem:[#allocation7 + $0x8] sm:$0xff] %v167_v33  ;;  %v595_v1 = vor.u32 %v594_v2, %v1896_v9  ;;  %vm598_vm5 = vcmp.lt.s32.totalorder %v1843_v29, 3  ;;  %vm599_vm6 = vcmp.lt.s32.totalorder %v1843_v29, 4 }
  0x81   :  { %1410 = shalt.err (!%p1407_p6)
}
  0x82   :  { %s1411_s27 = scalar_lea.hbm %s2175_s4, 256 }
  0x83   :  { %p1412_p7 = scmp.ne.s32.totalorder %s2175_s4, %s1411_s27  ;;  %p1415_p8 = scmp.lt.u32.totalorder %s1411_s27, %s2175_s4 }
  0x85   :  { %p1417_p9 = pnand %p1415_p8, %p1412_p7 }
  0x87   :  { %1420 = shalt.err (!%p1417_p9)
}
  0x88   :  { %1225 = dma.vmem_to_hbm [thread:$0]  %s1898_s21, 256, %s2175_s4, [#allocation9]   ;;  %v535_v63 = vshrl.u32 %v1820_v11, %v533_v3  ;;  %v538_v13 = vadd.s32 127, %v537_v27  ;;  %vm597_vm7 = vcmp.lt.s32.totalorder %v1843_v29, 2  ;;  %v601_v38 = vsel %vm599_vm6, %v1866_v40, 2102212464 }
  0x89   :  { %s1421_s10 = scalar_lea.vmem %s1902_s23, 256  ;;  %p1426_p11 = scmp.lt.s32.totalorder %s1902_s23, %s1902_s23 }
  0x8a   :  { %p1422_p10 = scmp.ne.s32.totalorder %s1902_s23, %s1421_s10  ;;  %p1427_p12 = scmp.lt.s32.totalorder %s1421_s10, %s1421_s10 }
  0x8c   :  { %p1428_p13 = por %p1427_p12, %p1426_p11 }
  0x8e   :  { %p1429_p0 = pnand %p1428_p13, %p1422_p10 }
  0x90   :  { %1432 = shalt.err (!%p1429_p0)
}
  0x91   :  { %s1433_s4 = scalar_lea.hbm %s2174_s3, 256 }
  0x92   :  { %p1434_p1 = scmp.ne.s32.totalorder %s2174_s3, %s1433_s4  ;;  %p1437_p2 = scmp.lt.u32.totalorder %s1433_s4, %s2174_s3 }
  0x94   :  { %p1439_p3 = pnand %p1437_p2, %p1434_p1 }
  0x96   :  { %1442 = shalt.err (!%p1439_p3)
}
  0x97   :  { %1215 = dma.vmem_to_hbm [thread:$0]  %s1902_s23, 256, %s2174_s3, [#allocation4]   ;;  %v600_v11 = vsel %vm596_vm3, %v1851_v6, %v1856_v32  ;;  %v602_v34 = vsel %vm598_vm5, %v1858_v46, %v601_v38  ;;  %v604_v42 = vsel %vm596_vm3, %v1856_v32, %v1858_v46  ;;  %v605_v48 = vsel %vm599_vm6, %v1879_v59, 920167782  ;;  %v1970_v30 = vpop.eup %1339 }
  0x98   :  { %v536_v49 = vor.u32 %v535_v63, %v534_v26  ;;  %v539_v10 = vshll.u32 %v538_v13, 23  ;;  %v606_v6 = vsel %vm598_vm5, %v1866_v40, %v605_v48  ;;  %v608_v7 = vsel %vm596_vm3, %v1858_v46, %v1866_v40  ;;  %v1979_v53 = vpop.eup %1341  ;;  %s1507_s3 = smov [#allocation10]   ;;  %s1508_s19 = smov [#allocation11]  }
  0x99   :  { %v548_v32 = vsel %vm463_vm0, %v547_v60, %v1801_v15  ;;  %v607_v54 = vsel %vm597_vm7, %v604_v42, %v606_v6  ;;  %v609_v45 = vsel %vm599_vm6, %v595_v1, 1326507024  ;;  %v863_v56 = vadd.s32 3, %v1809_v23  ;;  %s1232_s0 = sshll.u32 %s1507_s3, 4  ;;  %s1242_s1 = sshll.u32 %s1508_s19, 4  ;;  %s1233_s0 = int_to_ptr.vmem [resolvable:$true] %s1232_s0  ;;  %s1243_s1 = int_to_ptr.vmem [resolvable:$true] %s1242_s1 }
  0x9a   :  { %v540_v0 = vor.u32 4788187, %v539_v10  ;;  %v543_v61 = vcvt.s32.f32 %v536_v49  ;;  %v603_v62 = vsel %vm597_vm7, %v600_v11, %v602_v34  ;;  %v610_v46 = vsel %vm598_vm5, %v1879_v59, %v609_v45  ;;  %s1443_s20 = scalar_lea.vmem %s1233_s0, 256  ;;  %p1448_p5 = scmp.lt.s32.totalorder %s1233_s0, %s1233_s0 }
  0x9b   :  { %v457_v40 = vxor.u32 2147483648, %v1970_v30  ;;  %v611_v15 = vsel %vm597_vm7, %v608_v7, %v610_v46  ;;  %v1998_v14 = vmul.u32.u64.low %v1822_v12, %v607_v54  ;;  %v1999_v8 = vmul.u32.u64.high %v1822_v12, %v607_v54, %v1998_v14  ;;  %p1444_p4 = scmp.ne.s32.totalorder %s1233_s0, %s1443_s20  ;;  %p1449_p6 = scmp.lt.s32.totalorder %s1443_s20, %s1443_s20 }
  0x9c   :  { %v454_v23 = vxor.u32 2147483648, %v1979_v53  ;;  %v541_v18 = vand.u32 2147483647, %v540_v0  ;;  %v2004_v47 = vmul.u32.u64.low %v1822_v12, %v611_v15  ;;  %v2005_v16 = vmul.u32.u64.high %v1822_v12, %v611_v15, %v2004_v47 }
  0x9d   :  { %vm452_vm8 = vcmp.lt.s32.totalorder %v1812_v57, 2  ;;  %vm453_vm9 = vcmp.eq.s32.totalorder %v1812_v57, 0  ;;  %v675_v59 = vor.u32 8388608, %v1826_v44  ;;  %vm678_vm10 = vcmp.gt.s32.totalorder %v1847_v24, 0  ;;  %p1450_p7 = por %p1449_p6, %p1448_p5 }
  0x9e   :  { %v544_v29 = vmul.f32 %v543_v61, %v541_v18  ;;  %v2013_v17 = vsel %vm1909_vm4, 0, %v548_v32  ;;  %v619_v5 = vmul.u32 %v1822_v12, %v603_v62  ;;  %v679_v19 = vsel %vm678_vm10, %v1847_v24, 0 }
  0x9f   :  { %v458_v58 = vsel %vm456_vm2, %v457_v40, %v1979_v53  ;;  %v2023_v4 = vand.u32 3, %v2013_v17  ;;  %v622_v44 = vadd.s32 1, %v1999_v8  ;;  %v681_v28 = vand.u32 31, %v679_v19  ;;  %p1451_p8 = pnand %p1450_p7, %p1444_p4 }
  0xa0   :  { %v455_v9 = vsel %vm453_vm9, %v1970_v30, %v454_v23  ;;  %v545_v25 = vxor.u32 2147483648, %v544_v29  ;;  %vm621_vm11 = vc.u32 %v2005_v16, %v1998_v14  ;;  %v2031_v12 = vand.u32 3, %v863_v56 }
  0xa1   :  { %v623_v24 = vsel %vm621_vm11, %v622_v44, %v1999_v8  ;;  %v682_v33 = vsub.s32 32, %v681_v28  ;;  %v684_v36 = vshll.u32 %v1499_v35, %v681_v28  ;;  %v687_v2 = vshll.u32 %v1500_v37, %v681_v28 }
  0xa2   :  { %vm450_vm12 = vweird.f32 %v1602_v20  ;;  %v546_v3 = vsel %vm463_vm0, %v545_v25, %v544_v29  ;;  %v624_v26 = vadd.s32 %v623_v24, %v619_v5  ;;  %v690_v27 = vshll.u32 %v1501_v39, %v681_v28 }
  0xa3   :  { %v693_v60 = vshll.u32 %v1502_v41, %v681_v28  ;;  %v549_v1 = vsel %vm1909_vm4, %v1604_v21, %v546_v3  ;;  %v680_v63 = vshrl.u32 %v679_v19, 5  ;;  %v685_v13 = vshrl.u32 %v1500_v37, %v682_v33 }
  0xa4   :  { %v688_v38 = vshrl.u32 %v1501_v39, %v682_v33  ;;  %1343 = vcosq.f32 %v549_v1  ;;  %v625_v11 = vadd.s32 536870912, %v624_v26  ;;  %v691_v34 = vshrl.u32 %v1502_v41, %v682_v33 }
  0xa5   :  { %v694_v42 = vshrl.u32 %v1503_v43, %v682_v33  ;;  %1345 = vsinq.f32 %v549_v1  ;;  %v686_v48 = vor.u32 %v685_v13, %v684_v36  ;;  %v696_v10 = vshll.u32 %v1503_v43, %v681_v28 }
  0xa6   :  { %v689_v49 = vor.u32 %v688_v38, %v687_v2  ;;  %v2049_v6 = vshrl.u32 %v625_v11, 30  ;;  %v692_v55 = vor.u32 %v691_v34, %v690_v27  ;;  %v697_v32 = vshrl.u32 %v1504_v52, %v682_v33 }
  0xa7   :  { %v695_v7 = vor.u32 %v694_v42, %v693_v60  ;;  %vm556_vm13 = vcmp.eq.s32.totalorder %v2023_v4, 0  ;;  %v683_v37 = vshrl.u32 %v1499_v35, %v682_v33  ;;  %vm699_vm14 = vcmp.lt.s32.totalorder %v680_v63, 1 }
  0xa8   :  { %vm701_vm15 = vcmp.lt.s32.totalorder %v680_v63, 3  ;;  %vm702_vm0 = vcmp.lt.s32.totalorder %v680_v63, 4  ;;  %v459_v39 = vsel %vm452_vm8, %v455_v9, %v458_v58  ;;  %vm555_vm1 = vcmp.lt.s32.totalorder %v2023_v4, 2 }
  0xa9   :  { %v627_v41 = vshll.u32 %v2049_v6, 30  ;;  %v698_v43 = vor.u32 %v697_v32, %v696_v10  ;;  %vm700_vm2 = vcmp.lt.s32.totalorder %v680_v63, 2  ;;  %vm553_vm3 = vweird.f32 %v1604_v21 }
  0xaa   :  { %v704_v52 = vsel %vm702_vm0, %v692_v55, 2102212464  ;;  %v707_v54 = vsel %vm699_vm14, %v686_v48, %v689_v49  ;;  %v708_v35 = vsel %vm702_vm0, %v695_v7, 920167782  ;;  %v715_v45 = vshll.u32 %v675_v59, 8 }
  0xab   :  { %v2062_v56 = vsub.s32 %v624_v26, %v627_v41  ;;  %v709_v57 = vsel %vm701_vm15, %v692_v55, %v708_v35  ;;  %v711_v0 = vsel %vm699_vm14, %v689_v49, %v692_v55  ;;  %vm866_vm4 = vcmp.eq.s32.totalorder %v2031_v12, 0 }
  0xac   :  { %v703_v61 = vsel %vm699_vm14, %v683_v37, %v686_v48  ;;  %v705_v62 = vsel %vm701_vm15, %v689_v49, %v704_v52  ;;  %v710_v46 = vsel %vm700_vm2, %v707_v54, %v709_v57  ;;  %v712_v15 = vsel %vm702_vm0, %v698_v43, 1326507024 }
  0xad   :  { %vm559_vm5 = vcmp.eq.s32.totalorder %v2023_v4, 2  ;;  %v630_v8 = vsub.s32 0, %v2062_v56  ;;  %v713_v18 = vsel %vm701_vm15, %v695_v7, %v712_v15  ;;  %v967_v47 = vadd.s32 3, %v2013_v17 }
  0xae   :  { %v460_v59 = vsel %vm450_vm12, nan, %v459_v39  ;;  %v714_v29 = vsel %vm700_vm2, %v711_v0, %v713_v18  ;;  %v2078_v5 = vmul.u32.u64.low %v715_v45, %v710_v46  ;;  %v2079_v19 = vmul.u32.u64.high %v715_v45, %v710_v46, %v2078_v5  ;;  %v1344_v58 = vpop.eup %1343 }
  0xaf   :  { %v1280_v44 = vmin.u32 %v630_v8, %v2062_v56  ;;  %v706_v28 = vsel %vm700_vm2, %v703_v61, %v705_v62  ;;  %vm865_vm6 = vcmp.lt.s32.totalorder %v2031_v12, 2  ;;  %v868_v17 = vsel %vm866_vm4, %v1970_v30, %v454_v23  ;;  %v1346_v9 = vpop.eup %1345 }
  0xb0   :  { %v560_v25 = vxor.u32 2147483648, %v1344_v58  ;;  %v2090_v24 = vmul.u32.u64.low %v715_v45, %v714_v29  ;;  %v2091_v33 = vmul.u32.u64.high %v715_v45, %v714_v29, %v2090_v24  ;;  %vm869_vm7 = vcmp.eq.s32.totalorder %v2031_v12, 2 }
  0xb1   :  { %v557_v36 = vxor.u32 2147483648, %v1346_v9  ;;  %v632_v2 = vclz %v1280_v44  ;;  %v871_v3 = vsel %vm869_vm7, %v457_v40, %v1979_v53  ;;  %v968_v26 = vand.u32 3, %v967_v47 }
  0xb2   :  { %v561_v27 = vsel %vm559_vm5, %v560_v25, %v1346_v9  ;;  %v722_v60 = vmul.u32 %v715_v45, %v706_v28  ;;  %v725_v23 = vadd.s32 1, %v2079_v19  ;;  %v872_v1 = vsel %vm865_vm6, %v868_v17, %v871_v3 }
  0xb3   :  { %v558_v63 = vsel %vm556_vm13, %v1344_v58, %v557_v36  ;;  %v620_v12 = vadd.s32 %v1998_v14, %v2005_v16  ;;  %v1281_v13 = vadd.s32 4294967294, %v632_v2  ;;  %v873_v38 = vsel %vm450_vm12, nan, %v872_v1 }
  0xb4   :  { %v562_v30 = vsel %vm555_vm1, %v558_v63, %v561_v27  ;;  %vm724_vm8 = vc.u32 %v2091_v33, %v2078_v5  ;;  %vm969_vm9 = vcmp.lt.s32.totalorder %v968_v26, 2  ;;  %vm970_vm10 = vcmp.eq.s32.totalorder %v968_v26, 0 }
  0xb5   :  { %v563_v53 = vsel %vm553_vm3, nan, %v562_v30  ;;  %vm1282_vm11 = vcmp.lt.s32.totalorder %v1281_v13, 0  ;;  %v726_v40 = vsel %vm724_vm8, %v725_v23, %v2079_v19  ;;  %v972_v11 = vsel %vm970_vm10, %v1344_v58, %v557_v36 }
  0xb6   :  { %v1190_v14 = vcombine.low %v460_v59, %v563_v53  ;;  %v635_v16 = vsel %vm1282_vm11, 0, %v1281_v13  ;;  %v727_v34 = vadd.s32 %v726_v40, %v722_v60  ;;  %vm973_vm13 = vcmp.eq.s32.totalorder %v968_v26, 2 }
  0xb7   :  { %v636_v20 = vsub.s32 32, %v635_v16  ;;  %v637_v4 = vshll.u32 %v2062_v56, %v635_v16  ;;  %v640_v42 = vsub.s32 4294967266, %v635_v16  ;;  %v975_v48 = vsel %vm973_vm13, %v560_v25, %v1346_v9 }
  0xb8   :  { %1194 = vst [vmem:[#allocation10] sm:$0xff] %v1190_v14  ;;  %v728_v49 = vadd.s32 536870912, %v727_v34  ;;  %v976_v10 = vsel %vm969_vm9, %v972_v11, %v975_v48  ;;  %vm566_vm12 = vcmp.lt.s32.totalorder %v1730_v31, 0  ;;  %v723_v21 = vadd.s32 %v2078_v5, %v2091_v33 }
  0xb9   :  { %v638_v55 = vshrl.u32 %v620_v12, %v636_v20  ;;  %v641_v7 = vadd.s32 127, %v640_v42  ;;  %v977_v32 = vsel %vm553_vm3, nan, %v976_v10  ;;  %vm2122_vm15 = vcmp.le.f32.partialorder %v564_v22, 0.7853982 }
  0xba   :  { %v729_v37 = vshrl.u32 %v728_v49, 30  ;;  %v1200_v39 = vcombine.low %v873_v38, %v977_v32  ;;  %v650_v28 = vsub.s32 4, %v2049_v6  ;;  %vm669_vm0 = vcmp.lt.s32.totalorder %v1752_v51, 0 }
  0xbb   :  { %v639_v41 = vor.u32 %v638_v55, %v637_v4  ;;  %v642_v43 = vshll.u32 %v641_v7, 23  ;;  %vm668_vm1 = vcmp.le.f32.partialorder %v667_v50, 0.7853982  ;;  %vm656_vm8 = vweird.f32 %v1730_v31 }
  0xbc   :  { %v730_v52 = vshll.u32 %v729_v37, 30  ;;  %1204 = vst [vmem:[#allocation11] sm:$0xff] %v1200_v39  ;;  %v651_v24 = vsel %vm566_vm12, %v650_v28, %v2049_v6  ;;  %v753_v36 = vsub.s32 4, %v729_v37 }
  0xbd   :  { %v643_v54 = vor.u32 4788187, %v642_v43  ;;  %v646_v35 = vcvt.s32.f32 %v639_v41  ;;  %v653_v2 = vsel %vm2122_vm15, 0, %v651_v24 }
  0xbe   :  { %v731_v45 = vsub.s32 %v727_v34, %v730_v52  ;;  %v754_v27 = vsel %vm669_vm0, %v753_v36, %v729_v37  ;;  %v1071_v60 = vadd.s32 3, %v653_v2  ;;  %v657_v13 = vand.u32 3, %v653_v2 }
  0xbf   :  { %v644_v56 = vand.u32 2147483647, %v643_v54  ;;  %v756_v63 = vsel %vm668_vm1, 0, %v754_v27 }
  0xc0   :  { %v733_v57 = vsub.s32 0, %v731_v45  ;;  %v1072_v38 = vand.u32 3, %v1071_v60  ;;  %v1175_v30 = vadd.s32 3, %v756_v63  ;;  %vm659_vm2 = vcmp.eq.s32.totalorder %v657_v13, 0 }
  0xc1   :  { %v647_v0 = vmul.f32 %v646_v35, %v644_v56  ;;  %vm662_vm3 = vcmp.eq.s32.totalorder %v657_v13, 2  ;;  %v760_v50 = vand.u32 3, %v756_v63  ;;  %vm658_vm6 = vcmp.lt.s32.totalorder %v657_v13, 2 }
  0xc2   :  { %v1284_v61 = vmin.u32 %v733_v57, %v731_v45  ;;  %vm1074_vm4 = vcmp.eq.s32.totalorder %v1072_v38, 0  ;;  %vm1077_vm5 = vcmp.eq.s32.totalorder %v1072_v38, 2  ;;  %v1176_v11 = vand.u32 3, %v1175_v30 }
  0xc3   :  { %v648_v46 = vxor.u32 2147483648, %v647_v0  ;;  %vm1073_vm7 = vcmp.lt.s32.totalorder %v1072_v38, 2  ;;  %vm762_vm9 = vcmp.eq.s32.totalorder %v760_v50, 0  ;;  %vm765_vm10 = vcmp.eq.s32.totalorder %v760_v50, 2 }
  0xc4   :  { %v735_v62 = vclz %v1284_v61  ;;  %vm1181_vm11 = vcmp.eq.s32.totalorder %v1176_v11, 2  ;;  %vm1178_vm13 = vcmp.eq.s32.totalorder %v1176_v11, 0 }
  0xc5   :  { %v649_v47 = vsel %vm566_vm12, %v648_v46, %v647_v0  ;;  %vm761_vm12 = vcmp.lt.s32.totalorder %v760_v50, 2 }
  0xc6   :  { %v1285_v15 = vadd.s32 4294967294, %v735_v62  ;;  %v652_v5 = vsel %vm2122_vm15, %v1730_v31, %v649_v47  ;;  %vm759_vm15 = vweird.f32 %v1752_v51 }
  0xc7   :  { %1347 = vcosq.f32 %v652_v5 }
  0xc8   :  { %vm1286_vm14 = vcmp.lt.s32.totalorder %v1285_v15, 0  ;;  %1349 = vsinq.f32 %v652_v5 }
  0xc9   :  { %v738_v18 = vsel %vm1286_vm14, 0, %v1285_v15  ;;  %vm1177_vm14 = vcmp.lt.s32.totalorder %v1176_v11, 2 }
  0xca   :  { %v739_v59 = vsub.s32 32, %v738_v18  ;;  %v740_v29 = vshll.u32 %v731_v45, %v738_v18  ;;  %v743_v19 = vsub.s32 4294967266, %v738_v18 }
  0xcc   :  { %v741_v58 = vshrl.u32 %v723_v21, %v739_v59  ;;  %v744_v44 = vadd.s32 127, %v743_v19 }
  0xce   :  { %v742_v17 = vor.u32 %v741_v58, %v740_v29  ;;  %v745_v22 = vshll.u32 %v744_v44, 23 }
  0xd0   :  { %v746_v9 = vor.u32 4788187, %v745_v22  ;;  %v749_v25 = vcvt.s32.f32 %v742_v17 }
  0xd1   :  { %v1348_v6 = vpop.eup %1347 }
  0xd2   :  { %v747_v33 = vand.u32 2147483647, %v746_v9  ;;  %v1350_v12 = vpop.eup %1349  ;;  %v663_v40 = vxor.u32 2147483648, %v1348_v6 }
  0xd3   :  { %v660_v53 = vxor.u32 2147483648, %v1350_v12 }
  0xd4   :  { %v750_v3 = vmul.f32 %v749_v25, %v747_v33  ;;  %v664_v16 = vsel %vm662_vm3, %v663_v40, %v1350_v12  ;;  %v1079_v20 = vsel %vm1077_vm5, %v663_v40, %v1350_v12 }
  0xd5   :  { %v661_v14 = vsel %vm659_vm2, %v1348_v6, %v660_v53  ;;  %v1076_v34 = vsel %vm1074_vm4, %v1348_v6, %v660_v53 }
  0xd6   :  { %v751_v26 = vxor.u32 2147483648, %v750_v3  ;;  %v665_v48 = vsel %vm658_vm6, %v661_v14, %v664_v16  ;;  %v1080_v10 = vsel %vm1073_vm7, %v1076_v34, %v1079_v20 }
  0xd7   :  { %v666_v37 = vsel %vm656_vm8, nan, %v665_v48  ;;  %v1081_v41 = vsel %vm656_vm8, nan, %v1080_v10 }
  0xd8   :  { %v752_v23 = vsel %vm669_vm0, %v751_v26, %v750_v3 }
  0xd9   :  { %v755_v1 = vsel %vm668_vm1, %v1752_v51, %v752_v23 }
  0xda   :  { %1351 = vcosq.f32 %v755_v1 }
  0xdb   :  { %1353 = vsinq.f32 %v755_v1 }
  0xe4   :  { %v1352_v4 = vpop.eup %1351 }
  0xe5   :  { %v1354_v42 = vpop.eup %1353  ;;  %v766_v49 = vxor.u32 2147483648, %v1352_v4 }
  0xe6   :  { %v763_v55 = vxor.u32 2147483648, %v1354_v42 }
  0xe7   :  { %v767_v7 = vsel %vm765_vm10, %v766_v49, %v1354_v42  ;;  %v1183_v32 = vsel %vm1181_vm11, %v766_v49, %v1354_v42 }
  0xe8   :  { %v764_v39 = vsel %vm762_vm9, %v1352_v4, %v763_v55  ;;  %v1180_v43 = vsel %vm1178_vm13, %v1352_v4, %v763_v55 }
  0xe9   :  { %v768_v52 = vsel %vm761_vm12, %v764_v39, %v767_v7  ;;  %v1184_v54 = vsel %vm1177_vm14, %v1180_v43, %v1183_v32 }
  0xea   :  { %v769_v35 = vsel %vm759_vm15, nan, %v768_v52  ;;  %v1185_v45 = vsel %vm759_vm15, nan, %v1184_v54 }
  0xeb   :  { %v1191_v56 = vcombine.low %v666_v37, %v769_v35  ;;  %v1201_v51 = vcombine.low %v1081_v41, %v1185_v45 }
  0xed   :  { %1195 = vst [vmem:[#allocation10 + $0x8] sm:$0xff] %v1191_v56  ;;  %1205 = vst [vmem:[#allocation11 + $0x8] sm:$0xff] %v1201_v51 }
  0xee   :  { %1454 = shalt.err (!%p1451_p8)
}
  0xef   :  { %s1455_s22 = scalar_lea.hbm %s2176_s5, 256 }
  0xf0   :  { %p1456_p9 = scmp.ne.s32.totalorder %s2176_s5, %s1455_s22  ;;  %p1459_p10 = scmp.lt.u32.totalorder %s1455_s22, %s2176_s5 }
  0xf2   :  { %p1461_p11 = pnand %p1459_p10, %p1456_p9 }
  0xf4   :  { %1464 = shalt.err (!%p1461_p11)
}
  0xf5   :  { %1235 = dma.vmem_to_hbm [thread:$0]  %s1233_s0, 256, %s2176_s5, [#allocation9]  }
  0xf6   :  { %s1465_s29 = scalar_lea.vmem %s1243_s1, 256  ;;  %p1470_p13 = scmp.lt.s32.totalorder %s1243_s1, %s1243_s1 }
  0xf7   :  { %p1466_p12 = scmp.ne.s32.totalorder %s1243_s1, %s1465_s29  ;;  %p1471_p0 = scmp.lt.s32.totalorder %s1465_s29, %s1465_s29 }
  0xf9   :  { %p1472_p1 = por %p1471_p0, %p1470_p13 }
  0xfb   :  { %p1473_p2 = pnand %p1472_p1, %p1466_p12 }
  0xfd   :  { %1476 = shalt.err (!%p1473_p2)
}
  0xfe   :  { %s1477_s8 = scalar_lea.hbm %s2177_s6, 256 }
  0xff   :  { %p1478_p3 = scmp.ne.s32.totalorder %s2177_s6, %s1477_s8  ;;  %p1481_p4 = scmp.lt.u32.totalorder %s1477_s8, %s2177_s6 }
 0x101   :  { %p1483_p5 = pnand %p1481_p4, %p1478_p3 }
 0x103   :  { %1486 = shalt.err (!%p1483_p5)
}
 0x104   :  { %1245 = dma.vmem_to_hbm [thread:$0]  %s1243_s1, 256, %s2177_s6, [#allocation12]  }
 0x105   :  { %1491 = dma.done.wait [#allocation4], 256  }
 0x106   :  { %1492 = vsyncadd [#allocation4], 4294967040 }
 0x107   :  { %1493 = dma.done.wait [#allocation9], 512  }
 0x108   :  { %1494 = vsyncadd [#allocation9], 4294966784 }
 0x109   :  { %1495 = dma.done.wait [#allocation12], 256  }
 0x10a   :  { %1496 = vsyncadd [#allocation12], 4294967040 }
 0x10b   :  { %1258 = vsyncpa [#allocation3], 1 }
 0x10c   :  { %1259 = vsyncpa [#allocation6], 1 }
 0x10d   :  { %1260 = vsyncpa [#allocation4], 1 }
 0x10e   :  { %1261 = vsyncpa [#allocation9], 1 }
 0x10f   :  { %1262 = vsyncpa [#allocation12], 1 }

</bundles_post_ra>
